<compile_context>
chip_gen: v7x
topology: tpu7x:2x2x1
jax: 0.10.0
libtpu: 0.0.40
codegen_flags: <defaults>
</compile_context>

<pallas_src>
import functools

import jax
import jax.numpy as jnp
from jax import lax
from jax.experimental import pallas as pl
from jax.experimental.pallas import tpu as pltpu

LANES = 128
MAX_BLOCK_ROWS = 2048   # (2048,128) f32 = 1 MiB / input / pipeline buffer


def _cdiv(a, b):
    return -(-a // b)


def _round_up(a, b):
    return _cdiv(a, b) * b


def _num_parallel_cores():
    """2 for dual-TensorCore chips (v4/v5p megacore, v7x); 1 for v5e/v6e."""
    try:
        kind = jax.devices()[0].device_kind.lower()
    except Exception:
        return 2
    if "v5e" in kind or "v5 lite" in kind or "v6" in kind:
        return 1
    return 2


def _qfocal_kernel(pred_ref, true_ref, out_ref, acc_ref, *,
                   n, gamma, alpha, block_rows, nblk_per_core):
    c = pl.program_id(0)
    i = pl.program_id(1)

    @pl.when(i == 0)
    def _init():
        acc_ref[...] = jnp.zeros_like(acc_ref)

    x = pred_ref[...].astype(jnp.float32)
    t = true_ref[...].astype(jnp.float32)

    # 3 EUP transcendentals / element (tanh, log, sqrt):
    #   r   = sigmoid(|x|) = 0.5*(1 + tanh(|x|/2))
    #   bce = max(x,0) - x*t + log1p(exp(-|x|)) = max(x,0) - x*t - log(r)
    #   p   = sigmoid(x)   = where(x>=0, r, 1-r)
    r = 0.5 * (1.0 + jnp.tanh(0.5 * jnp.abs(x)))
    bce = jnp.maximum(x, 0.0) - x * t - jnp.log(r)
    p = jnp.where(x >= 0.0, r, 1.0 - r)

    alpha_factor = t * alpha + (1.0 - t) * (1.0 - alpha)
    d = jnp.abs(t - p)
    if gamma == 1.0:
        modulating = d
    elif gamma == 1.5:
        modulating = d * jnp.sqrt(d)         # d**1.5 without pow (no exp+log)
    elif gamma == 2.0:
        modulating = d * d
    elif gamma == 0.5:
        modulating = jnp.sqrt(d)
    else:
        modulating = jnp.power(d, gamma)
    loss = bce * alpha_factor * modulating

    # Fold sublane-tile-wise into the small (8,128) accumulator (pure VALU
    # adds; tile-aligned reshape => no data movement, tiny acc RMW per step).
    def _accum(v):
        acc_ref[...] += jnp.sum(v.reshape(block_rows // 8, 8, LANES), axis=0)

    # Only the block(s) that reach past the valid data pay for mask math.
    blk = c * nblk_per_core + i
    n_full_rows = n // LANES            # static Python ints
    n_rem = n % LANES
    needs_mask = (blk + 1) * block_rows > n_full_rows

    @pl.when(jnp.logical_not(needs_mask))
    def _fast():
        _accum(loss)

    @pl.when(needs_mask)
    def _tail():
        # Row/lane-granular validity (no n-scale int32 multiply -> no overflow
        # for any realistic element count).  Select (not multiply) so garbage
        # from padded / out-of-bounds rows (possibly NaN/Inf) is discarded.
        grow = blk * block_rows + lax.broadcasted_iota(
            jnp.int32, (block_rows, LANES), 0)
        lane = lax.broadcasted_iota(jnp.int32, (block_rows, LANES), 1)
        valid = (grow < n_full_rows) | ((grow == n_full_rows) & (lane < n_rem))
        _accum(jnp.where(valid, loss, 0.0))

    @pl.when(i == pl.num_programs(1) - 1)
    def _flush():
        out_ref[...] = jnp.sum(acc_ref[...]).reshape(1, 1, 1)


def qfocal_loss(pred, true, gamma=1.5, alpha=0.25, reduction="mean"):
    """pred, true: same-shape arrays (any dtype, e.g. f32/bf16 NCHW logits).

    Returns the scalar QFocal loss (reduction 'mean' or 'sum')."""
    assert pred.shape == true.shape
    n = pred.size
    num_cores = _num_parallel_cores()

    rows = _cdiv(n, LANES)
    pad = rows * LANES - n

    # Free reshape in the common case (n % 128 == 0); otherwise a sub-128-
    # element pad whose producer XLA may fuse into the kernel operands.
    pflat = jnp.ravel(pred)
    tflat = jnp.ravel(true)
    if pad:
        pflat = jnp.pad(pflat, (0, pad))
        tflat = jnp.pad(tflat, (0, pad))
    pred2d = pflat.reshape(rows, LANES)
    true2d = tflat.reshape(rows, LANES)

    block_rows = min(MAX_BLOCK_ROWS,
                     max(8, _round_up(_cdiv(rows, num_cores), 8)))
    nblk_per_core = _cdiv(rows, num_cores * block_rows)

    kernel = functools.partial(
        _qfocal_kernel, n=n, gamma=gamma, alpha=alpha,
        block_rows=block_rows, nblk_per_core=nblk_per_core)

    blk_spec = pl.BlockSpec((block_rows, LANES),
                            lambda c, i: (c * nblk_per_core + i, 0))

    partials = pl.pallas_call(
        kernel,
        out_shape=jax.ShapeDtypeStruct((num_cores, 1, 1), jnp.float32),
        grid_spec=pltpu.PrefetchScalarGridSpec(
            num_scalar_prefetch=0,
            grid=(num_cores, nblk_per_core),
            in_specs=[blk_spec, blk_spec],
            out_specs=pl.BlockSpec((1, 1, 1), lambda c, i: (c, 0, 0)),
            scratch_shapes=[pltpu.VMEM((8, LANES), jnp.float32)],
        ),
        compiler_params=pltpu.CompilerParams(
            dimension_semantics=("parallel", "arbitrary"),
            vmem_limit_bytes=32 * 1024 * 1024,
            allow_input_fusion=[True, True],
        ),
    )(pred2d, true2d)

    total = jnp.sum(partials)
    if reduction == "mean":
        return total / jnp.float32(n)
    elif reduction == "sum":
        return total
    else:
        # TODO(synk): reduction='none' (elementwise output) needs a separate
        # elementwise-output kernel; only 'mean'/'sum' implemented here.
        raise NotImplementedError("reduction='none' not implemented")


def _reference(pred, true, gamma=1.5, alpha=0.25):
    x = pred.astype(jnp.float32)
    t = true.astype(jnp.float32)
    bce = jnp.maximum(x, 0.0) - x * t + jnp.log1p(jnp.exp(-jnp.abs(x)))
    p = jax.nn.sigmoid(x)
    af = t * alpha + (1.0 - t) * (1.0 - alpha)
    mf = jnp.abs(t - p) ** gamma
    return jnp.mean(bce * af * mf)


if __name__ == "__main__":
    key = jax.random.PRNGKey(0)
    k1, k2 = jax.random.split(key)
    # NCHW-style objectness/cls logits, like the torch module would see.
    pred = jax.random.normal(k1, (2, 4, 16, 16), dtype=jnp.float32)
    true = (jax.random.uniform(k2, (2, 4, 16, 16)) > 0.5).astype(jnp.float32)

    out = qfocal_loss(pred, true)
    out = jax.block_until_ready(out)

    ref = _reference(pred, true)
    assert jnp.allclose(out, ref, rtol=1e-5, atol=1e-5), (out, ref)
    print("KERNEL_OK")
</pallas_src>

<mosaic_0001>
module attributes {stable_mosaic.version = 11 : i64} {
  func.func @_qfocal_kernel(%arg0: i32, %arg1: i32, %arg2: memref<8x128xf32, #tpu.memory_space<vmem>>, %arg3: memref<8x128xf32, #tpu.memory_space<vmem>>, %arg4: memref<1x1x1xf32, #tpu.memory_space<vmem>>, %arg5: memref<8x128xf32, #tpu.memory_space<vmem>>) attributes {dimension_semantics = [#tpu.dimension_semantics<parallel>, #tpu.dimension_semantics<arbitrary>], iteration_bounds = array<i64: 2, 1>, scalar_prefetch = 0 : i64, scratch_operands = 1 : i64, tpu.core_type = #tpu.core_type<tc>, window_params = [{transform_indices = @transform_0, window_bounds = array<i64: 8, 128>}, {transform_indices = @transform_1, window_bounds = array<i64: 8, 128>}, {transform_indices = @transform_2, window_bounds = array<i64: 1, 1, 1>}]} {
    %c0_i32 = arith.constant 0 : i32
    %0 = arith.cmpi eq, %arg1, %c0_i32 : i32
    %1 = arith.extui %0 : i1 to i32
    %c0_i32_0 = arith.constant 0 : i32
    %2 = arith.cmpi ne, %1, %c0_i32_0 : i32
    scf.if %2 {
      %cst_17 = arith.constant 0.000000e+00 : f32
      %50 = vector.broadcast %cst_17 : f32 to vector<8x128xf32>
      %c0_18 = arith.constant 0 : index
      %c0_19 = arith.constant 0 : index
      %51 = vector.load %arg5[%c0_18, %c0_19] : memref<8x128xf32, #tpu.memory_space<vmem>>, vector<8x128xf32>
      tpu.vector_store %arg5[%c0_18, %c0_19], %50 {strides = array<i32>} : memref<8x128xf32, #tpu.memory_space<vmem>>, vector<8x128xf32>,
    } else {
    }
    %c0 = arith.constant 0 : index
    %c0_1 = arith.constant 0 : index
    %3 = vector.load %arg2[%c0, %c0_1] : memref<8x128xf32, #tpu.memory_space<vmem>>, vector<8x128xf32>
    %c0_2 = arith.constant 0 : index
    %c0_3 = arith.constant 0 : index
    %4 = vector.load %arg3[%c0_2, %c0_3] : memref<8x128xf32, #tpu.memory_space<vmem>>, vector<8x128xf32>
    %5 = math.absf %3 : vector<8x128xf32>
    %cst = arith.constant 5.000000e-01 : f32
    %6 = vector.broadcast %cst : f32 to vector<8x128xf32>
    %7 = arith.mulf %6, %5 : vector<8x128xf32>
    %8 = math.tanh %7 : vector<8x128xf32>
    %cst_4 = arith.constant 1.000000e+00 : f32
    %9 = vector.broadcast %cst_4 : f32 to vector<8x128xf32>
    %10 = arith.addf %9, %8 : vector<8x128xf32>
    %cst_5 = arith.constant 5.000000e-01 : f32
    %11 = vector.broadcast %cst_5 : f32 to vector<8x128xf32>
    %12 = arith.mulf %11, %10 : vector<8x128xf32>
    %cst_6 = arith.constant 0.000000e+00 : f32
    %13 = vector.broadcast %cst_6 : f32 to vector<8x128xf32>
    %14 = arith.maximumf %3, %13 : vector<8x128xf32>
    %15 = arith.mulf %3, %4 : vector<8x128xf32>
    %16 = arith.subf %14, %15 : vector<8x128xf32>
    %17 = math.log %12 : vector<8x128xf32>
    %18 = arith.subf %16, %17 : vector<8x128xf32>
    %cst_7 = arith.constant 0.000000e+00 : f32
    %19 = vector.broadcast %cst_7 : f32 to vector<8x128xf32>
    %20 = arith.cmpf oge, %3, %19 : vector<8x128xf32>
    %cst_8 = arith.constant 1.000000e+00 : f32
    %21 = vector.broadcast %cst_8 : f32 to vector<8x128xf32>
    %22 = arith.subf %21, %12 : vector<8x128xf32>
    %23 = arith.select %20, %12, %22 : vector<8x128xi1>, vector<8x128xf32>
    %cst_9 = arith.constant 2.500000e-01 : f32
    %24 = vector.broadcast %cst_9 : f32 to vector<8x128xf32>
    %25 = arith.mulf %4, %24 : vector<8x128xf32>
    %cst_10 = arith.constant 1.000000e+00 : f32
    %26 = vector.broadcast %cst_10 : f32 to vector<8x128xf32>
    %27 = arith.subf %26, %4 : vector<8x128xf32>
    %cst_11 = arith.constant 7.500000e-01 : f32
    %28 = vector.broadcast %cst_11 : f32 to vector<8x128xf32>
    %29 = arith.mulf %27, %28 : vector<8x128xf32>
    %30 = arith.addf %25, %29 : vector<8x128xf32>
    %31 = arith.subf %4, %23 : vector<8x128xf32>
    %32 = math.absf %31 : vector<8x128xf32>
    %33 = math.sqrt %32 : vector<8x128xf32>
    %34 = arith.mulf %32, %33 : vector<8x128xf32>
    %35 = arith.mulf %18, %30 : vector<8x128xf32>
    %36 = arith.mulf %35, %34 : vector<8x128xf32>
    %c1_i32 = arith.constant 1 : i32
    %37 = arith.muli %arg0, %c1_i32 : i32
    %38 = arith.addi %37, %arg1 : i32
    %c1_i32_12 = arith.constant 1 : i32
    %39 = arith.addi %38, %c1_i32_12 : i32
    %c8_i32 = arith.constant 8 : i32
    %40 = arith.muli %39, %c8_i32 : i32
    %c16_i32 = arith.constant 16 : i32
    %41 = arith.cmpi sgt, %40, %c16_i32 : i32
    %true = arith.constant true
    %42 = arith.xori %41, %true : i1
    %43 = arith.extui %42 : i1 to i32
    %c0_i32_13 = arith.constant 0 : i32
    %44 = arith.cmpi ne, %43, %c0_i32_13 : i32
    scf.if %44 {
      %c0_17 = arith.constant 0 : index
      %c0_18 = arith.constant 0 : index
      %50 = vector.load %arg5[%c0_17, %c0_18] : memref<8x128xf32, #tpu.memory_space<vmem>>, vector<8x128xf32>
      %51 = vector.shape_cast %36 : vector<8x128xf32> to vector<1x8x128xf32>
      %cst_19 = arith.constant dense<0.000000e+00> : vector<8x128xf32>
      %52 = vector.multi_reduction <add>, %51, %cst_19 [0] : vector<1x8x128xf32> to vector<8x128xf32>
      %53 = arith.addf %50, %52 : vector<8x128xf32>
      %c0_20 = arith.constant 0 : index
      %c0_21 = arith.constant 0 : index
      %54 = vector.load %arg5[%c0_20, %c0_21] : memref<8x128xf32, #tpu.memory_space<vmem>>, vector<8x128xf32>
      tpu.vector_store %arg5[%c0_20, %c0_21], %53 {strides = array<i32>} : memref<8x128xf32, #tpu.memory_space<vmem>>, vector<8x128xf32>,
    } else {
    }
    %45 = arith.extui %41 : i1 to i32
    %c0_i32_14 = arith.constant 0 : i32
    %46 = arith.cmpi ne, %45, %c0_i32_14 : i32
    scf.if %46 {
      %c8_i32_17 = arith.constant 8 : i32
      %50 = arith.muli %38, %c8_i32_17 : i32
      %51 = tpu.iota {dimensions = array<i32: 0>} : vector<8x128xi32>
      %52 = vector.broadcast %50 : i32 to vector<8x128xi32>
      %53 = arith.addi %52, %51 : vector<8x128xi32>
      %54 = tpu.iota {dimensions = array<i32: 1>} : vector<8x128xi32>
      %c16_i32_18 = arith.constant 16 : i32
      %55 = vector.broadcast %c16_i32_18 : i32 to vector<8x128xi32>
      %56 = arith.cmpi slt, %53, %55 : vector<8x128xi32>
      %c16_i32_19 = arith.constant 16 : i32
      %57 = vector.broadcast %c16_i32_19 : i32 to vector<8x128xi32>
      %58 = arith.cmpi eq, %53, %57 : vector<8x128xi32>
      %c0_i32_20 = arith.constant 0 : i32
      %59 = vector.broadcast %c0_i32_20 : i32 to vector<8x128xi32>
      %60 = arith.cmpi slt, %54, %59 : vector<8x128xi32>
      %61 = arith.andi %58, %60 : vector<8x128xi1>
      %62 = arith.ori %56, %61 : vector<8x128xi1>
      %cst_21 = arith.constant 0.000000e+00 : f32
      %63 = vector.broadcast %cst_21 : f32 to vector<8x128xf32>
      %64 = arith.select %62, %36, %63 : vector<8x128xi1>, vector<8x128xf32>
      %c0_22 = arith.constant 0 : index
      %c0_23 = arith.constant 0 : index
      %65 = vector.load %arg5[%c0_22, %c0_23] : memref<8x128xf32, #tpu.memory_space<vmem>>, vector<8x128xf32>
      %66 = vector.shape_cast %64 : vector<8x128xf32> to vector<1x8x128xf32>
      %cst_24 = arith.constant dense<0.000000e+00> : vector<8x128xf32>
      %67 = vector.multi_reduction <add>, %66, %cst_24 [0] : vector<1x8x128xf32> to vector<8x128xf32>
      %68 = arith.addf %65, %67 : vector<8x128xf32>
      %c0_25 = arith.constant 0 : index
      %c0_26 = arith.constant 0 : index
      %69 = vector.load %arg5[%c0_25, %c0_26] : memref<8x128xf32, #tpu.memory_space<vmem>>, vector<8x128xf32>
      tpu.vector_store %arg5[%c0_25, %c0_26], %68 {strides = array<i32>} : memref<8x128xf32, #tpu.memory_space<vmem>>, vector<8x128xf32>,
    } else {
    }
    %c0_i32_15 = arith.constant 0 : i32
    %47 = arith.cmpi eq, %arg1, %c0_i32_15 : i32
    %48 = arith.extui %47 : i1 to i32
    %c0_i32_16 = arith.constant 0 : i32
    %49 = arith.cmpi ne, %48, %c0_i32_16 : i32
    scf.if %49 {
      %c0_17 = arith.constant 0 : index
      %c0_18 = arith.constant 0 : index
      %50 = vector.load %arg5[%c0_17, %c0_18] : memref<8x128xf32, #tpu.memory_space<vmem>>, vector<8x128xf32>
      %51 = vector.shape_cast %50 : vector<8x128xf32> to vector<1x8x128xf32>
      %cst_19 = arith.constant dense<0.000000e+00> : vector<1xf32>
      %52 = vector.multi_reduction <add>, %51, %cst_19 [1, 2] : vector<1x8x128xf32> to vector<1xf32>
      %53 = vector.shape_cast %52 : vector<1xf32> to vector<1x1x1xf32>
      %54 = vector.extract %53[0, 0, 0] : f32 from vector<1x1x1xf32>
      %55 = vector.broadcast %54 : f32 to vector<1x1x1xf32>
      %c0_20 = arith.constant 0 : index
      %c0_21 = arith.constant 0 : index
      %c0_22 = arith.constant 0 : index
      %56 = vector.load %arg4[%c0_20, %c0_21, %c0_22] : memref<1x1x1xf32, #tpu.memory_space<vmem>>, vector<1x1x1xf32>
      tpu.vector_store %arg4[%c0_20, %c0_21, %c0_22], %55 {strides = array<i32>} : memref<1x1x1xf32, #tpu.memory_space<vmem>>, vector<1x1x1xf32>,
    } else {
    }
    return
  }
  func.func @transform_0(%arg0: i32, %arg1: i32) -> (i32, i32) {
    %c1_i32 = arith.constant 1 : i32
    %0 = arith.muli %arg0, %c1_i32 : i32
    %1 = arith.addi %0, %arg1 : i32
    %c0_i32 = arith.constant 0 : i32
    %c0_i32_0 = arith.constant 0 : i32
    return %1, %c0_i32 : i32, i32
  }
  func.func @transform_1(%arg0: i32, %arg1: i32) -> (i32, i32) {
    %c1_i32 = arith.constant 1 : i32
    %0 = arith.muli %arg0, %c1_i32 : i32
    %1 = arith.addi %0, %arg1 : i32
    %c0_i32 = arith.constant 0 : i32
    %c0_i32_0 = arith.constant 0 : i32
    return %1, %c0_i32 : i32, i32
  }
  func.func @transform_2(%arg0: i32, %arg1: i32) -> (i32, i32, i32) {
    %c0_i32 = arith.constant 0 : i32
    %c0_i32_0 = arith.constant 0 : i32
    %c0_i32_1 = arith.constant 0 : i32
    return %arg0, %c0_i32, %c0_i32_0 : i32, i32, i32
  }
}

</mosaic_0001>

<bundles_post_ra>
// kernel: tpu_custom_call.1
= control target key start
LH: loop header
LB: loop body
LE: loop exit
PB: predicated region body
PF: predicated region fallthrough
CT: control target
= control target key end

     0   :  { %7 = vsyncpa [#allocation4], 0  ;;  %s802_s0 = inlined_call_operand.hbm [shape: f32[16,128], index: 0, kind: input, shape index: {}]   ;;  %s803_s1 = inlined_call_operand.hbm [shape: f32[16,128], index: 1, kind: input, shape index: {}]   ;;  %s804_s2 = inlined_call_operand.vmem [shape: f32[2,1,1], index: 2, kind: output, shape index: {}]  }
   0x1   :  { %9 = vsyncpa [#allocation4 + $0x1], 0 }
   0x2   :  { %10 = vsyncpa [#allocation6], 0 }
   0x3   :  { %12 = vsyncpa [#allocation6 + $0x1], 0  ;;  %s613_s9 = smov 0   ;;  %s615_s10 = smov 0  }
   0x4   :  { %s617_s11 = smov 0   ;;  %s619_s12 = smov 0  }
   0x5   :  { %s621_s13 = smov 0   ;;  %s623_s14 = smov 0  }
   0x6 LB: > { %s391_s15 = sadd.s32 4294967295, %s593_s14   ;;  %s30_s16 = sadd.s32 1, %s589_s13  ;;  %s593_s14 = sphi %s623_s14, %s18_s14   ;;  %s589_s13 = sphi %s621_s13, %s818_s13   ;;  %s585_s12 = sphi %s619_s12, %s817_s12   ;;  %s581_s11 = sphi %s617_s11, %s816_s11   ;;  %s577_s10 = sphi %s615_s10, %s815_s10   ;;  %s573_s9 = sphi %s613_s9, %s814_s9  }
   0x7   : > { %p32_p0 = scmp.ge.s32.totalorder %s30_s16, 2  ;;  %s39_s17 = sadd.s32 1, %s581_s11 }
   0x8   : > { %p46_p1 = scmp.ne.s32.totalorder %s581_s11, %s577_s10  ;;  %p47_p2 = scmp.eq.s32.totalorder %s593_s14, 0 }
   0x9   : > { %s820_s16 = smov (%p32_p0, %s30_s16), 0  ;;  %p52_p4 = scmp.ne.s32.totalorder %s577_s10, %s573_s9 }
   0xa   : > { %p649_p3 = por %p47_p2, %p46_p1  ;;  %s36_s19 = ssub.s32 %s589_s13, %s820_s16 }
   0xb   : > { %p53_p5 = scmp.eq.s32.totalorder %s391_s15, 0  ;;  %p37_p6 = scmp.eq.s32.totalorder %s36_s19, 0 }
   0xc   : > { %p423_p8 = scmp.lt.s32.totalorder %s593_s14, 2  ;;  %s665_s22 = sand.u32 1, %s581_s11  }
   0xd   : > { %p656_p7 = por %p53_p5, %p52_p4  ;;  %s396_s23 = sshll.u32 %s589_s13, 7 }
   0xe   : > { %s662_s21 = scalar_select %p37_p6, %s581_s11, %s39_s17  }
   0xf   : > { %s807_s20 = scalar_select %p656_p7, 1, 0 }
  0x10   : > { %s395_s24 = sshll.u32 %s665_s22, 3  ;;  %s674_s27 = scalar_lea.hbm %s802_s0, %s396_s23 }
  0x11   : > { %s134_s28 = scalar_lea.vmem [#allocation3], %s395_s24  ;;  %p680_p9 = pnand %p423_p8, %p649_p3 }
  0x12   : > { %s142_s29 = sshll.u32 %s134_s28, 4  ;;  %s131_s3 = scalar_lea.sflag [#allocation4], %s665_s22  ;;  %s684_s29 = int_to_ptr.vmem [resolvable:$true] %s142_s29 }
  0x13   : > { %s479_s4 = scalar_lea.hbm %s674_s27, 128  ;;  %p481_p13 = pneg %p680_p9 }
  0x14   : > { %p480_p12 = scmp.ne.s32.totalorder %s674_s27, %s479_s4  ;;  %s484_s7 = scalar_lea.hbm %s802_s0, 256 }
  0x15   : > { %p485_p2 = scmp.lt.u32.totalorder %s674_s27, %s802_s0  ;;  %p486_p3 = scmp.lt.u32.totalorder %s484_s7, %s479_s4 }
  0x16   : > { %p482_p0 = pnand %p481_p13, %p480_p12  ;;  %p488_p5 = scmp.lt.u32.totalorder %s479_s4, %s674_s27 }
  0x17   : > { %p487_p4 = por %p486_p3, %p485_p2 }
  0x18   : > { %p483_p1 = pneg %p482_p0 }
  0x19   : > { %p489_p6 = por %p488_p5, %p487_p4 }
  0x1b   : > { %p490_p8 = pnand %p489_p6, %p483_p1 }
  0x1d   : > { %493 = shalt.err (!%p490_p8)
}
  0x1e   : > { %s494_s15 = scalar_lea.vmem %s684_s29, 128  ;;  %s595_s17 = smov [#allocation3]  }
  0x1f   : > { %p495_p12 = scmp.ne.s32.totalorder %s684_s29, %s494_s15  ;;  %s499_s18 = sshll.u32 %s595_s17, 4  ;;  %s500_s18 = int_to_ptr.vmem [resolvable:$false] %s499_s18 }
  0x20   : > { %s501_s19 = scalar_lea.vmem %s500_s18, 256  ;;  %p502_p11 = scmp.lt.s32.totalorder %s684_s29, %s500_s18 }
  0x21   : > { %p497_p0 = pnand %p495_p12, %p481_p13  ;;  %p503_p2 = scmp.lt.s32.totalorder %s501_s19, %s494_s15 }
  0x23   : > { %p498_p10 = pneg %p497_p0  ;;  %p504_p3 = por %p503_p2, %p502_p11 }
  0x25   : > { %p505_p4 = pnand %p504_p3, %p498_p10 }
  0x27   : > { %508 = shalt.err (!%p505_p4)
}
  0x28   : > { %419 = dma.hbm_to_vmem [thread:$0]  (!%p680_p9), %s674_s27, 128, %s684_s29, %s131_s3  }
  0x29   : > { %p809_p1 = scmp.lt.s32.totalorder %s593_s14, 3  ;;  %p810_p5 = scmp.ge.s32.totalorder %s593_s14, 1 }
  0x2a   : > { %s727_s4 = scalar_lea.hbm %s803_s1, %s396_s23  ;;  %s153_s5 = scalar_lea.vmem [#allocation5], %s395_s24 }
  0x2b   : > { %p718_p6 = pnand %p810_p5, %p809_p1  ;;  %s161_s6 = sshll.u32 %s153_s5, 4  ;;  %s162_s6 = int_to_ptr.vmem [resolvable:$true] %s161_s6 }
  0x2c   : > { %s150_s27 = scalar_lea.sflag [#allocation6], %s665_s22  ;;  %s509_s29 = scalar_lea.hbm %s727_s4, 128 }
  0x2d   : > { %s811_s25 = scalar_select %p718_p6, 1, 0 }
  0x2e   : > { %p510_p10 = scmp.ne.s32.totalorder %s727_s4, %s509_s29  ;;  %s514_s23 = scalar_lea.hbm %s803_s1, 256 }
  0x2f   : > { %p515_p12 = scmp.lt.u32.totalorder %s727_s4, %s803_s1  ;;  %p516_p0 = scmp.lt.u32.totalorder %s514_s23, %s509_s29 }
  0x30   : > { %p512_p11 = pnand %p510_p10, %p481_p13  ;;  %p518_p3 = scmp.lt.u32.totalorder %s509_s29, %s727_s4 }
  0x31   : > { %p517_p2 = por %p516_p0, %p515_p12 }
  0x32   : > { %p513_p8 = pneg %p512_p11 }
  0x33   : > { %p519_p4 = por %p518_p3, %p517_p2 }
  0x35   : > { %p520_p1 = pnand %p519_p4, %p513_p8 }
  0x37   : > { %523 = shalt.err (!%p520_p1)
}
  0x38   : > { %s524_s22 = scalar_lea.vmem %s162_s6, 128  ;;  %s596_s24 = smov [#allocation5]  }
  0x39   : > { %p525_p5 = scmp.ne.s32.totalorder %s162_s6, %s524_s22  ;;  %s529_s15 = sshll.u32 %s596_s24, 4  ;;  %s530_s15 = int_to_ptr.vmem [resolvable:$false] %s529_s15 }
  0x3a   : > { %s531_s17 = scalar_lea.vmem %s530_s15, 256  ;;  %p532_p7 = scmp.lt.s32.totalorder %s162_s6, %s530_s15 }
  0x3b   : > { %p527_p10 = pnand %p525_p5, %p481_p13  ;;  %p533_p6 = scmp.lt.s32.totalorder %s531_s17, %s524_s22 }
  0x3d   : > { %p528_p11 = pneg %p527_p10  ;;  %p534_p0 = por %p533_p6, %p532_p7 }
  0x3f   : > { %p535_p12 = pnand %p534_p0, %p528_p11 }
  0x41   : > { %538 = shalt.err (!%p535_p12)
}
  0x42   : > { %422 = dma.hbm_to_vmem [thread:$0]  (!%p680_p9), %s727_s4, 128, %s162_s6, %s150_s27  }
  0x43   : > { %p812_p8 = scmp.ne.s32.totalorder %s811_s25, 0 }
  0x44   : > { %s172_s18 = sand.u32 (!%p812_p8), 1, %s577_s10   ;;  %p813_p13 = scmp.ne.s32.totalorder (!%p812_p8), %s807_s20, 0 }
  0x45   : > { %170 = sbr.rel (%p812_p8) target bundleno = 353 (0x161), region = 28  ;;  %s400_s19 = sshll.u32 (!%p812_p8), %s172_s18, 3 }
  0x46   : > { %s173_s26 = scalar_lea.sflag (!%p812_p8), [#allocation4], %s172_s18  ;;  %s176_s28 = scalar_lea.vmem (!%p812_p8), [#allocation3], %s400_s19 }
  0x4c   : > { %564 = dma.done.wait (%p813_p13), %s173_s26, 128  }
  0x4d   : > { %566 = vsyncadd (%p813_p13), %s173_s26, 4294967168  ;;  %s182_s5 = scalar_lea.sflag [#allocation6], %s172_s18  ;;  %s185_s29 = scalar_lea.vmem [#allocation5], %s400_s19 }
  0x4e   : > { %568 = dma.done.wait (%p813_p13), %s182_s5, 128  }
  0x4f   : > { %570 = vsyncadd (%p813_p13), %s182_s5, 4294967168  ;;  %p211_p7 = scmp.lt.s32.totalorder %s585_s12, 1  ;;  %s408_s30 = sshll.u32 %s585_s12, 3  ;;  %v597_v0 = vmov 0.0   ;;  %v219_v1 = vld [vmem:[%s176_s28] sm:$0xff]  ;;  %v220_v7 = vld [vmem:[%s185_s29] sm:$0xff] }
  0x50   : > { %218 = vst [vmem:[#allocation2] sm:$0xff] %v597_v0  ;;  %s766_s25 = sadd.s32 8, %s408_s30  ;;  %v221_v2 = vand.u32 2147483647, %v219_v1  ;;  %vm232_vm0 = vcmp.ge.f32.partialorder %v219_v1, 0.0  ;;  %v226_v12 = vmax.f32 %v219_v1, 0.0  ;;  %v227_v13 = vmul.f32 %v220_v7, %v219_v1 }
  0x51   : > { %s769_s4 = scalar_select %p211_p7, %s585_s12, 1  ;;  %v236_v14 = vsub.f32 1.0, %v220_v7  ;;  %v235_v18 = vmul.f32 0.25, %v220_v7 }
  0x52   : > { %v222_v3 = vmul.f32 0.5, %v221_v2  ;;  %v228_v16 = vsub.f32 %v226_v12, %v227_v13  ;;  %p403_p9 = scmp.gt.s32.totalorder %s766_s25, 16 }
  0x53   : > { %s213_s3 = scalar_lea.vmem %s804_s2, %s769_s4  ;;  %v237_v19 = vmul.f32 0.75, %v236_v14 }
  0x54   : > { %473 = vtanh.f32 %v222_v3 }
  0x55   : > { %v238_v21 = vadd.f32 %v237_v19, %v235_v18 }
  0x57   : > { %v259_v30 = vld [vmem:[#allocation2] sm:$0xff] (!%p403_p9) }
  0x5e   : > { %v474_v4 = vpop.eup %473 }
  0x5f   : > { %v224_v5 = vadd.f32 1.0, %v474_v4 }
  0x61   : > { %v225_v6 = vmul.f32 0.5, %v224_v5 }
  0x63   : > { %475 = vlog2.f32 %v225_v6  ;;  %v233_v8 = vsub.f32 1.0, %v225_v6 }
  0x65   : > { %v234_v9 = vsel %vm232_vm0, %v225_v6, %v233_v8 }
  0x66   : > { %v239_v10 = vsub.f32 %v220_v7, %v234_v9 }
  0x68   : > { %v240_v11 = vand.u32 2147483647, %v239_v10 }
  0x6a   : > { %477 = vrsqrt.f32 %v240_v11  ;;  %vm243_vm1 = vcmp.eq.f32.partialorder %v240_v11, inf  ;;  %v246_v23 = vand.u32 2147483648, %v240_v11  ;;  %vm245_vm2 = vcmp.eq.f32.partialorder %v240_v11, 0.0 }
  0x6d   : > { %v476_v15 = vpop.eup %475 }
  0x6e   : > { %v230_v17 = vmul.f32 0.6931472, %v476_v15 }
  0x70   : > { %v231_v20 = vsub.f32 %v228_v16, %v230_v17 }
  0x72   : > { %v249_v26 = vmul.f32 %v238_v21, %v231_v20 }
  0x74   : > { %v478_v22 = vpop.eup %477 }
  0x75   : > { %v242_v24 = vmul.f32 %v478_v22, %v240_v11  ;;  %258 = sbr.rel (%p403_p9) target bundleno = 128 (0x80), region = 44 }
  0x77   : > { %v244_v25 = vsel %vm243_vm1, %v240_v11, %v242_v24 }
  0x78   : > { %v247_v27 = vsel %vm245_vm2, %v246_v23, %v244_v25 }
  0x79   : > { %v248_v28 = vmul.f32 %v247_v27, %v240_v11 }
  0x7b   : > { %v250_v29 = vmul.f32 %v249_v26, %v248_v28 }
  0x7d   : > { %v261_v31 = vadd.f32 %v259_v30, %v250_v29 }
  0x7f   : > { %262 = vst [vmem:[#allocation2] sm:$0xff] %v261_v31 }
  0x80 PF: > { %p404_p6 = scmp.le.s32.totalorder %s766_s25, 16 }
  0x81   : > { %v267_v32 = vlaneseq (!%p404_p6)  ;;  %v269_v33 = vstv (!%p404_p6), %s408_s30 }
  0x82   : > { %265 = sbr.rel (%p404_p6) target bundleno = 140 (0x8c), region = 48 }
  0x83   : > { %v268_v34 = vshrl.u32 (!%p404_p6), %v267_v32, 7 }
  0x85   : > { %v270_v35 = vadd.s32 (!%p404_p6), %v269_v33, %v268_v34 }
  0x86   : > { %v279_v36 = vld [vmem:[#allocation2] sm:$0xff] (!%p404_p6) }
  0x87   : > { %vm273_vm3 = vcmp.lt.s32.totalorder (!%p404_p6), %v270_v35, 16 }
  0x88   : > { %v278_v37 = vsel (!%p404_p6), %vm273_vm3, %v250_v29, 0.0 }
  0x89   : > { %v281_v38 = vadd.f32 %v279_v36, %v278_v37 }
  0x8b   : > { %282 = vst [vmem:[#allocation2] sm:$0xff] %v281_v38 }
  0x8c PF: > { %vm297_vm4 = vcmask 0  }
  0x92   : > { %v286_v39 = vld [vmem:[#allocation2] sm:$0xff] }
  0x93   : > { %287 = vadd.xlane.f32.xlu0 %v286_v39 }
 0x120   : > { %v288_v40 = vpop.xlane.xlu0 %287 }
 0x121   : > { %v289_v41 = vrot.slane %v288_v40, 4 }
 0x123   : > { %v290_v42 = vadd.f32 %v289_v41, %v288_v40 }
 0x125   : > { %v291_v43 = vrot.slane %v290_v42, 2 }
 0x127   : > { %v292_v44 = vadd.f32 %v291_v43, %v290_v42 }
 0x129   : > { %v293_v45 = vrot.slane %v292_v44, 1 }
 0x12b   : > { %v294_v46 = vadd.f32 %v293_v45, %v292_v44 }
 0x12d   : > { %410 = vpush %v294_v46 }
 0x15e   : > { %s411_s12 = spop %410 }
 0x15f   : > { %v296_v47 = vstv %s411_s12 }
 0x160   : > { %298 = vst.msk [vmem:[%s213_s3] sm:$0x1] %vm297_vm4, %v296_v47 }
 0x161 PF: > { %s18_s14 = sadd.s32 1, %s593_s14   ;;  %s814_s9 = smov %s577_s10 }
 0x162   : > { %p15_p2 = scmp.ge.s32.totalorder %s18_s14, 4   ;;  %s815_s10 = smov %s581_s11 }
 0x163   : > { %s816_s11 = smov %s662_s21  ;;  %s817_s12 = smov %s589_s13 }
 0x164   : > { %s818_s13 = smov %s820_s16  ;;  %17 = sbr.rel (!%p15_p2) target bundleno = 6 (0x6), region = 97 }
 0x16b   :  { %316 = vsyncpa [#allocation4], 1 }
 0x16c   :  { %318 = vsyncpa [#allocation4 + $0x1], 1 }
 0x16d   :  { %319 = vsyncpa [#allocation6], 1 }
 0x16e   :  { %321 = vsyncpa [#allocation6 + $0x1], 1 }

</bundles_post_ra>
